<compile_context>
chip_gen: v6e
topology: v6e:2x2x1
jax: 0.10.0
libtpu: 0.0.40
codegen_flags: <defaults>
</compile_context>

<pallas_src>
import functools

import jax
import jax.numpy as jnp
from jax import lax
from jax.experimental import pallas as pl
from jax.experimental.pallas import tpu as pltpu

LANE = 128                       # lane width: feature/hidden/class dims padded to this
VMEM_LIMIT = 32 * 1024 * 1024    # explicit scoped-VMEM ceiling (safe on v5e..v7x)


def _round_up(x, m):
    return (x + m - 1) // m * m


# --------------------------- Kernel 1: XW1 = X @ W1 ---------------------------
def xw1_kernel(x_ref, w1_ref, o_ref):
    o_ref[...] = jnp.dot(
        x_ref[...], w1_ref[...], preferred_element_type=jnp.float32
    ).astype(o_ref.dtype)


# ---------------- Kernel 2: HW2 = ReLU(A @ XW1 + b1) @ W2 ---------------------
def hop1_kernel(a_ref, xw1_ref, b1_ref, w2_ref, o_ref, acc_ref):
    k = pl.program_id(1)

    @pl.when(k == 0)
    def _():
        acc_ref[...] = jnp.zeros_like(acc_ref)

    acc_ref[...] += jnp.dot(
        a_ref[...], xw1_ref[...], preferred_element_type=jnp.float32
    )

    @pl.when(k == pl.num_programs(1) - 1)
    def _():
        h1 = jnp.maximum(acc_ref[...] + b1_ref[...], 0.0)
        # Dropout: module is evaluated in inference mode -> identity.
        # TODO(synk): stochastic dropout (pltpu.prng_random_bits) for training=True.
        o_ref[...] = jnp.dot(
            h1.astype(w2_ref.dtype), w2_ref[...], preferred_element_type=jnp.float32
        ).astype(o_ref.dtype)


# ------------- Kernel 3: OUT = log_softmax(A @ HW2 + b2, dim=1) ---------------
def hop2_kernel(a_ref, hw2_ref, b2_ref, o_ref, acc_ref, *, num_classes):
    k = pl.program_id(1)

    @pl.when(k == 0)
    def _():
        acc_ref[...] = jnp.zeros_like(acc_ref)

    acc_ref[...] += jnp.dot(
        a_ref[...], hw2_ref[...], preferred_element_type=jnp.float32
    )

    @pl.when(k == pl.num_programs(1) - 1)
    def _():
        z = acc_ref[...] + b2_ref[...]
        # Only the first `num_classes` lanes are real classes: mask padded lanes
        # to -inf so they don't corrupt the max / normalizer.
        col = lax.broadcasted_iota(jnp.int32, z.shape, 1)
        valid = col < num_classes
        z = jnp.where(valid, z, -jnp.inf)
        m = jnp.max(z, axis=1, keepdims=True)
        shifted = z - m
        lse = jnp.log(jnp.sum(jnp.exp(shifted), axis=1, keepdims=True))
        o_ref[...] = jnp.where(valid, shifted - lse, 0.0)


# --------------------------------- Wrapper ------------------------------------
def gcn_forward(x, a_hat, w1, b1, w2, b2, *, tm=256, tk=256):
    n, f = x.shape
    h = w1.shape[1]
    c = w2.shape[1]

    # Clamp tiles so tiny graphs don't over-pad; keep them 128-aligned.
    n128 = _round_up(n, LANE)
    tm = min(tm, n128)
    tk = min(tk, n128)

    n_pad = _round_up(n, max(tm, tk))
    f_pad = _round_up(f, LANE)
    h_pad = _round_up(h, LANE)
    c_pad = _round_up(c, LANE)

    # Zero-pad to tile/lane-aligned shapes; big streamed operands go bf16.
    x_p = jnp.zeros((n_pad, f_pad), jnp.bfloat16).at[:n, :f].set(x.astype(jnp.bfloat16))
    a_p = jnp.zeros((n_pad, n_pad), jnp.bfloat16).at[:n, :n].set(
        a_hat.astype(jnp.bfloat16))
    w1_p = jnp.zeros((f_pad, h_pad), jnp.bfloat16).at[:f, :h].set(w1.astype(jnp.bfloat16))
    b1_p = jnp.zeros((1, h_pad), jnp.float32).at[:, :h].set(b1.reshape(1, h))
    w2_p = jnp.zeros((h_pad, c_pad), jnp.bfloat16).at[:h, :c].set(
        w2.astype(jnp.bfloat16))
    b2_p = jnp.zeros((1, c_pad), jnp.float32).at[:, :c].set(b2.reshape(1, c))

    ni = n_pad // tm
    nk = n_pad // tk

    # ---- 1) XW1 = X @ W1 ----
    xw1 = pl.pallas_call(
        xw1_kernel,
        out_shape=jax.ShapeDtypeStruct((n_pad, h_pad), jnp.bfloat16),
        grid_spec=pltpu.PrefetchScalarGridSpec(
            num_scalar_prefetch=0,
            grid=(ni,),
            in_specs=[
                pl.BlockSpec((tm, f_pad), lambda i: (i, 0)),
                pl.BlockSpec((f_pad, h_pad), lambda i: (0, 0)),
            ],
            out_specs=pl.BlockSpec((tm, h_pad), lambda i: (i, 0)),
        ),
        compiler_params=pltpu.CompilerParams(
            dimension_semantics=("parallel",),
            vmem_limit_bytes=VMEM_LIMIT,
        ),
        cost_estimate=pl.CostEstimate(
            flops=2 * n_pad * f_pad * h_pad,
            transcendentals=0,
            bytes_accessed=n_pad * f_pad * 2 + f_pad * h_pad * 2 + n_pad * h_pad * 2,
        ),
    )(x_p, w1_p)

    # ---- 2) HW2 = ReLU(A @ XW1 + b1) @ W2 ----
    hw2 = pl.pallas_call(
        hop1_kernel,
        out_shape=jax.ShapeDtypeStruct((n_pad, c_pad), jnp.bfloat16),
        grid_spec=pltpu.PrefetchScalarGridSpec(
            num_scalar_prefetch=0,
            grid=(ni, nk),
            in_specs=[
                pl.BlockSpec((tm, tk), lambda i, k: (i, k)),
                pl.BlockSpec((tk, h_pad), lambda i, k: (k, 0)),
                pl.BlockSpec((1, h_pad), lambda i, k: (0, 0)),
                pl.BlockSpec((h_pad, c_pad), lambda i, k: (0, 0)),
            ],
            out_specs=pl.BlockSpec((tm, c_pad), lambda i, k: (i, 0)),
            scratch_shapes=[pltpu.VMEM((tm, h_pad), jnp.float32)],
        ),
        compiler_params=pltpu.CompilerParams(
            dimension_semantics=("parallel", "arbitrary"),
            vmem_limit_bytes=VMEM_LIMIT,
        ),
        cost_estimate=pl.CostEstimate(
            flops=2 * n_pad * n_pad * h_pad + 2 * n_pad * h_pad * c_pad,
            transcendentals=0,
            bytes_accessed=n_pad * n_pad * 2 + n_pad * h_pad * 2 + n_pad * c_pad * 2,
        ),
    )(a_p, xw1, b1_p, w2_p)

    # ---- 3) OUT = log_softmax(A @ HW2 + b2) ----
    out_pad = pl.pallas_call(
        functools.partial(hop2_kernel, num_classes=c),
        out_shape=jax.ShapeDtypeStruct((n_pad, c_pad), jnp.float32),
        grid_spec=pltpu.PrefetchScalarGridSpec(
            num_scalar_prefetch=0,
            grid=(ni, nk),
            in_specs=[
                pl.BlockSpec((tm, tk), lambda i, k: (i, k)),
                pl.BlockSpec((tk, c_pad), lambda i, k: (k, 0)),
                pl.BlockSpec((1, c_pad), lambda i, k: (0, 0)),
            ],
            out_specs=pl.BlockSpec((tm, c_pad), lambda i, k: (i, 0)),
            scratch_shapes=[pltpu.VMEM((tm, c_pad), jnp.float32)],
        ),
        compiler_params=pltpu.CompilerParams(
            dimension_semantics=("parallel", "arbitrary"),
            vmem_limit_bytes=VMEM_LIMIT,
        ),
        cost_estimate=pl.CostEstimate(
            flops=2 * n_pad * n_pad * c_pad,
            transcendentals=n_pad * c_pad,
            bytes_accessed=n_pad * n_pad * 2 + n_pad * c_pad * 2 + n_pad * c_pad * 4,
        ),
    )(a_p, hw2, b2_p)

    return out_pad[:n, :c]


# ------------------------ Glue: normalized adjacency --------------------------
def build_normalized_adjacency(edge_index, num_nodes):
    """Dense D^-1/2 (A + I) D^-1/2, the GCNConv propagation matrix (plain JAX).

    Note: duplicate edges are deduplicated and self-loops are only added where
    missing (matches torch_geometric gcn_norm on a coalesced, unweighted
    edge_index; uncoalesced duplicates would be summed by PyG).
    """
    src, dst = edge_index[0], edge_index[1]
    a = jnp.zeros((num_nodes, num_nodes), jnp.float32).at[dst, src].set(1.0)
    a = jnp.maximum(a, jnp.eye(num_nodes, dtype=jnp.float32))  # add remaining self-loops
    deg = jnp.sum(a, axis=1)
    d_inv_sqrt = jnp.where(deg > 0, 1.0 / jnp.sqrt(deg), 0.0)
    return d_inv_sqrt[:, None] * a * d_inv_sqrt[None, :]


if __name__ == "__main__":
    # Small synthetic graph standing in for Cora (N intentionally not a
    # multiple of 128 to exercise the padding path).
    N = 200        # num nodes
    F_IN = 32      # dataset.num_node_features (synthetic)
    HID = 16       # GCNConv hidden size (from the module)
    C = 8          # dataset.num_classes (synthetic)
    E = 400        # num directed edges

    key = jax.random.PRNGKey(0)
    kx, ke1, ke2, kw1, kw2 = jax.random.split(key, 5)

    # Node features.
    x = jax.random.normal(kx, (N, F_IN), dtype=jnp.float32)

    # Deterministic random edge_index (2, E): ring + random edges.
    ring_src = jnp.arange(N, dtype=jnp.int32)
    ring_dst = (ring_src + 1) % N
    rand_src = jax.random.randint(ke1, (E - N,), 0, N, dtype=jnp.int32)
    rand_dst = jax.random.randint(ke2, (E - N,), 0, N, dtype=jnp.int32)
    edge_index = jnp.stack(
        [jnp.concatenate([ring_src, rand_src]),
         jnp.concatenate([ring_dst, rand_dst])], axis=0)

    # Deterministic parameter init (Glorot-uniform-ish like PyG GCNConv, zero bias).
    lim1 = (6.0 / (F_IN + HID)) ** 0.5
    lim2 = (6.0 / (HID + C)) ** 0.5
    w1 = jax.random.uniform(kw1, (F_IN, HID), jnp.float32, -lim1, lim1)
    b1 = jnp.zeros((1, HID), jnp.float32)
    w2 = jax.random.uniform(kw2, (HID, C), jnp.float32, -lim2, lim2)
    b2 = jnp.zeros((1, C), jnp.float32)

    a_hat = build_normalized_adjacency(edge_index, N)

    out = gcn_forward(x, a_hat, w1, b1, w2, b2)
    out = jax.block_until_ready(out)

    # Sanity 1: shape + rows of log_softmax exponentiate-sum to ~1.
    assert out.shape == (N, C)
    row_sums = jnp.exp(out).sum(axis=1)
    assert bool(jnp.all(jnp.abs(row_sums - 1.0) < 1e-3))

    # Sanity 2: match a pure-JAX f32 reference (bf16-streaming tolerance).
    xw1_ref = x @ w1
    h1_ref = jnp.maximum(a_hat @ xw1_ref + b1, 0.0)
    z_ref = a_hat @ (h1_ref @ w2) + b2
    ref = z_ref - jax.scipy.special.logsumexp(z_ref, axis=1, keepdims=True)
    assert bool(jnp.max(jnp.abs(out - ref)) < 1e-1)

    print("KERNEL_OK")
</pallas_src>

<mosaic_0001>
module attributes {stable_mosaic.version = 11 : i64} {
  func.func @xw1_kernel(%arg0: i32, %arg1: memref<256x128xbf16, #tpu.memory_space<vmem>>, %arg2: memref<128x128xbf16, #tpu.memory_space<vmem>>, %arg3: memref<256x128xbf16, #tpu.memory_space<vmem>>) attributes {dimension_semantics = [#tpu.dimension_semantics<parallel>], iteration_bounds = array<i64: 1>, scalar_prefetch = 0 : i64, scratch_operands = 0 : i64, tpu.core_type = #tpu.core_type<tc>, window_params = [{transform_indices = @transform_0, window_bounds = array<i64: 256, 128>}, {pipeline_mode = #tpu.pipeline_mode<synchronous>, transform_indices = @transform_1, window_bounds = array<i64: 128, 128>}, {transform_indices = @transform_2, window_bounds = array<i64: 256, 128>}]} {
    %c0 = arith.constant 0 : index
    %c0_0 = arith.constant 0 : index
    %0 = vector.load %arg1[%c0, %c0_0] : memref<256x128xbf16, #tpu.memory_space<vmem>>, vector<256x128xbf16>
    %c0_1 = arith.constant 0 : index
    %c0_2 = arith.constant 0 : index
    %1 = vector.load %arg2[%c0_1, %c0_2] : memref<128x128xbf16, #tpu.memory_space<vmem>>, vector<128x128xbf16>
    %cst = arith.constant dense<0.000000e+00> : vector<256x128xf32>
    %2 = tpu.matmul %0, %1, %cst {dimension_numbers = #tpu.dot_dimension_numbers<[1], [0], [0], [1], [0, 0, 1, 1], [], []>} : vector<256x128xbf16>, vector<128x128xbf16>, vector<256x128xf32> -> vector<256x128xf32>
    %3 = arith.truncf %2 : vector<256x128xf32> to vector<256x128xbf16>
    %c0_3 = arith.constant 0 : index
    %c0_4 = arith.constant 0 : index
    %4 = vector.load %arg3[%c0_3, %c0_4] : memref<256x128xbf16, #tpu.memory_space<vmem>>, vector<256x128xbf16>
    tpu.vector_store %arg3[%c0_3, %c0_4], %3 {strides = array<i32>} : memref<256x128xbf16, #tpu.memory_space<vmem>>, vector<256x128xbf16>,
    return
  }
  func.func @transform_0(%arg0: i32) -> (i32, i32) {
    %c0_i32 = arith.constant 0 : i32
    %c0_i32_0 = arith.constant 0 : i32
    return %arg0, %c0_i32 : i32, i32
  }
  func.func @transform_1(%arg0: i32) -> (i32, i32) {
    %c0_i32 = arith.constant 0 : i32
    %c0_i32_0 = arith.constant 0 : i32
    %c0_i32_1 = arith.constant 0 : i32
    return %c0_i32, %c0_i32_0 : i32, i32
  }
  func.func @transform_2(%arg0: i32) -> (i32, i32) {
    %c0_i32 = arith.constant 0 : i32
    %c0_i32_0 = arith.constant 0 : i32
    return %arg0, %c0_i32 : i32, i32
  }
}

</mosaic_0001>

<bundles_post_ra>
// kernel: tpu_custom_call.1
= control target key start
LH: loop header
LB: loop body
LE: loop exit
PB: predicated region body
PF: predicated region fallthrough
CT: control target
= control target key end

     0   :  { %7 = vsyncpa [#allocation3], 0  ;;  %s976_s0 = inlined_call_operand.hbm [shape: bf16[256,128], index: 0, kind: input, shape index: {}]   ;;  %s977_s1 = inlined_call_operand.hbm [shape: bf16[128,128], index: 1, kind: input, shape index: {}]   ;;  %s978_s2 = inlined_call_operand.hbm [shape: bf16[256,128], index: 2, kind: output, shape index: {}]  }
   0x1   :  { %8 = vsyncpa [#allocation6], 0 }
   0x2   :  { %9 = vsyncpa [#allocation4], 0  ;;  %s938_s9 = smov [#allocation2]  }
   0x3   :  { %s15_s10 = sshll.u32 %s938_s9, 4  ;;  %s16_s10 = int_to_ptr.vmem [resolvable:$true] %s15_s10 }
   0x4   :  { %s880_s11 = scalar_lea.vmem %s16_s10, 2048  ;;  %p885_p1 = scmp.lt.s32.totalorder %s16_s10, %s16_s10 }
   0x5   :  { %p881_p0 = scmp.ne.s32.totalorder %s16_s10, %s880_s11  ;;  %p886_p2 = scmp.lt.s32.totalorder %s880_s11, %s880_s11 }
   0x7   :  { %p887_p3 = por %p886_p2, %p885_p1 }
   0x9   :  { %p888_p4 = pnand %p887_p3, %p881_p0 }
   0xb   :  { %891 = shalt.err (!%p888_p4)
}
   0xc   :  { %s939_s12 = smov 64   ;;  %s940_s13 = smov 4  }
   0xd   :  { %21 = dma.hbm_to_vmem [thread:$0]  %s976_s0, 2048, %s16_s10, [#allocation3], %s939_s12, %s939_s12, %s940_s13  }
   0xe   :  { %s941_s16 = smov [#allocation5]  }
   0xf   :  { %s27_s17 = sshll.u32 %s941_s16, 4  ;;  %s28_s17 = int_to_ptr.vmem [resolvable:$true] %s27_s17 }
  0x10   :  { %s900_s18 = scalar_lea.vmem %s28_s17, 1024  ;;  %p905_p6 = scmp.lt.s32.totalorder %s28_s17, %s28_s17 }
  0x11   :  { %p901_p5 = scmp.ne.s32.totalorder %s28_s17, %s900_s18  ;;  %p906_p7 = scmp.lt.s32.totalorder %s900_s18, %s900_s18 }
  0x13   :  { %p907_p8 = por %p906_p7, %p905_p6 }
  0x15   :  { %p908_p9 = pnand %p907_p8, %p901_p5 }
  0x17   :  { %911 = shalt.err (!%p908_p9)
}
  0x18   :  { %33 = dma.hbm_to_vmem [thread:$0]  %s977_s1, 1024, %s28_s17, [#allocation6], %s939_s12, %s939_s12, %s940_s13  }
  0x19   :  { %932 = dma.done.wait [#allocation3], 2048  }
  0x1a   :  { %933 = vsyncadd [#allocation3], 4294965248 }
  0x1b   :  { %934 = dma.done.wait [#allocation6], 1024  }
  0x1c   :  { %935 = vsyncadd [#allocation6], 4294966272  ;;  %v848_v0 = vld [vmem:[#allocation5 + $0x38] sm:$0xff]   ;;  %v849_v1 = vld [vmem:[#allocation5 + $0x30] sm:$0xff]   ;;  %s942_s0 = smov [#allocation7]  }
  0x1d   :  { %779 = vmatprep.subr.bf16.mxu0 %v848_v0  ;;  %827 = vmatprep.subr.bf16.mxu1 %v848_v0  ;;  %v850_v2 = vld [vmem:[#allocation5 + $0x28] sm:$0xff]   ;;  %v851_v3 = vld [vmem:[#allocation5 + $0x20] sm:$0xff]   ;;  %v852_v6 = vld [vmem:[#allocation5 + $0x18] sm:$0xff]   ;;  %s559_s1 = sshll.u32 %s942_s0, 4  ;;  %s560_s1 = int_to_ptr.vmem [resolvable:$true] %s559_s1 }
  0x1e   :  { %780 = vmatpush3.bf16.msra.mxu0 %v848_v0  ;;  %835 = vmatpush3.bf16.msra.mxu1 %v848_v0  ;;  %v856_v4 = vld [vmem:[#allocation2] sm:$0xff]   ;;  %v853_v7 = vld [vmem:[#allocation5 + $0x10] sm:$0xff]   ;;  %v854_v8 = vld [vmem:[#allocation5 + $0x8] sm:$0xff]   ;;  %s912_s21 = scalar_lea.vmem %s560_s1, 2048  ;;  %p917_p11 = scmp.lt.s32.totalorder %s560_s1, %s560_s1 }
  0x1f   :  { %781 = vmatprep.subr.bf16.mxu0 %v849_v1  ;;  %828 = vmatprep.subr.bf16.mxu1 %v849_v1  ;;  %v857_v5 = vld [vmem:[#allocation2 + $0x40] sm:$0xff]   ;;  %v858_v10 = vld [vmem:[#allocation2 + $0x8] sm:$0xff]   ;;  %v860_v12 = vld [vmem:[#allocation2 + $0x10] sm:$0xff]   ;;  %p913_p10 = scmp.ne.s32.totalorder %s560_s1, %s912_s21  ;;  %p918_p12 = scmp.lt.s32.totalorder %s912_s21, %s912_s21 }
  0x20   :  { %795 = vmatprep.mubr.bf16.mxu0 %v856_v4  ;;  %811 = vmatprep.mubr.bf16.mxu1 %v857_v5  ;;  %v855_v9 = vld [vmem:[#allocation5] sm:$0xff]   ;;  %v859_v11 = vld [vmem:[#allocation2 + $0x48] sm:$0xff]   ;;  %v861_v13 = vld [vmem:[#allocation2 + $0x50] sm:$0xff]  }
  0x21   :  { %v862_v14 = vld [vmem:[#allocation2 + $0x18] sm:$0xff]   ;;  %v864_v16 = vld [vmem:[#allocation2 + $0x20] sm:$0xff]   ;;  %v866_v18 = vld [vmem:[#allocation2 + $0x28] sm:$0xff]   ;;  %p919_p13 = por %p918_p12, %p917_p11 }
  0x22   :  { %782 = vmatpush3.bf16.msra.mxu0 %v849_v1  ;;  %836 = vmatpush3.bf16.msra.mxu1 %v849_v1  ;;  %v863_v15 = vld [vmem:[#allocation2 + $0x58] sm:$0xff]   ;;  %v865_v17 = vld [vmem:[#allocation2 + $0x60] sm:$0xff]   ;;  %v867_v19 = vld [vmem:[#allocation2 + $0x68] sm:$0xff]  }
  0x23   :  { %783 = vmatprep.subr.bf16.mxu0 %v850_v2  ;;  %829 = vmatprep.subr.bf16.mxu1 %v850_v2  ;;  %v868_v20 = vld [vmem:[#allocation2 + $0x30] sm:$0xff]   ;;  %v870_v22 = vld [vmem:[#allocation2 + $0x38] sm:$0xff]   ;;  %p920_p0 = pnand %p919_p13, %p913_p10 }
  0x24   :  { %v869_v21 = vld [vmem:[#allocation2 + $0x70] sm:$0xff]   ;;  %v871_v23 = vld [vmem:[#allocation2 + $0x78] sm:$0xff]  }
  0x26   :  { %784 = vmatpush3.bf16.msra.mxu0 %v850_v2  ;;  %837 = vmatpush3.bf16.msra.mxu1 %v850_v2 }
  0x27   :  { %785 = vmatprep.subr.bf16.mxu0 %v851_v3  ;;  %830 = vmatprep.subr.bf16.mxu1 %v851_v3 }
  0x2a   :  { %786 = vmatpush3.bf16.msra.mxu0 %v851_v3  ;;  %838 = vmatpush3.bf16.msra.mxu1 %v851_v3 }
  0x2b   :  { %787 = vmatprep.subr.bf16.mxu0 %v852_v6  ;;  %831 = vmatprep.subr.bf16.mxu1 %v852_v6 }
  0x2e   :  { %788 = vmatpush3.bf16.msra.mxu0 %v852_v6  ;;  %839 = vmatpush3.bf16.msra.mxu1 %v852_v6 }
  0x2f   :  { %789 = vmatprep.subr.bf16.mxu0 %v853_v7  ;;  %832 = vmatprep.subr.bf16.mxu1 %v853_v7 }
  0x32   :  { %790 = vmatpush3.bf16.msra.mxu0 %v853_v7  ;;  %840 = vmatpush3.bf16.msra.mxu1 %v853_v7 }
  0x33   :  { %791 = vmatprep.subr.bf16.mxu0 %v854_v8  ;;  %833 = vmatprep.subr.bf16.mxu1 %v854_v8 }
  0x36   :  { %792 = vmatpush3.bf16.msra.mxu0 %v854_v8  ;;  %841 = vmatpush3.bf16.msra.mxu1 %v854_v8 }
  0x37   :  { %793 = vmatprep.subr.bf16.mxu0 %v855_v9  ;;  %834 = vmatprep.subr.bf16.mxu1 %v855_v9 }
  0x3a   :  { %794 = vmatpush3.bf16.msra.mxu0 %v855_v9  ;;  %842 = vmatpush3.bf16.msra.mxu1 %v855_v9 }
  0x3d   :  { %796 = vmatmul.mubr.bf16.vlgmr.msra.gmra.mxu0 %v858_v10  ;;  %812 = vmatmul.mubr.bf16.vlgmr.msra.gmra.mxu1 %v859_v11 }
  0x3e   :  { %799 = vmatprep.mubr.bf16.mxu0 %v860_v12  ;;  %815 = vmatprep.mubr.bf16.mxu1 %v861_v13 }
  0x45   :  { %800 = vmatmul.mubr.bf16.gmra.mxu0 %v862_v14  ;;  %816 = vmatmul.mubr.bf16.gmra.mxu1 %v863_v15 }
  0x46   :  { %803 = vmatprep.mubr.bf16.mxu0 %v864_v16  ;;  %819 = vmatprep.mubr.bf16.mxu1 %v865_v17 }
  0x4d   :  { %804 = vmatmul.mubr.bf16.gmra.mxu0 %v866_v18  ;;  %820 = vmatmul.mubr.bf16.gmra.mxu1 %v867_v19 }
  0x4e   :  { %807 = vmatprep.mubr.bf16.mxu0 %v868_v20  ;;  %823 = vmatprep.mubr.bf16.mxu1 %v869_v21 }
  0x55   :  { %808 = vmatmul.mubr.bf16.gmra.mxu0 %v870_v22  ;;  %824 = vmatmul.mubr.bf16.gmra.mxu1 %v871_v23 }
  0xfd   :  { %v797_v24 = vpop.f32.mrf.mxu0  ;;  %v813_v25 = vpop.f32.mrf.mxu1 }
  0xff   :  { %v267_v26 = vpop.f32.mrf.mxu0  ;;  %v331_v27 = vpop.f32.mrf.mxu1 }
 0x101   :  { %v798_v28 = vpop.f32.mrf.mxu0  ;;  %v814_v29 = vpop.f32.mrf.mxu1 }
 0x102   :  { %v668_v30 = vpack.c.bf16 %v798_v28, %v797_v24  ;;  %v708_v31 = vpack.c.bf16 %v814_v29, %v813_v25 }
 0x103   :  { %v270_v32 = vpop.f32.mrf.mxu0  ;;  %v334_v33 = vpop.f32.mrf.mxu1 }
 0x104   :  { %740 = vst [vmem:[#allocation7 + $0x8] sm:$0xff] %v668_v30   ;;  %748 = vst [vmem:[#allocation7 + $0x48] sm:$0xff] %v708_v31   ;;  %v663_v34 = vpack.c.bf16 %v270_v32, %v267_v26  ;;  %v703_v35 = vpack.c.bf16 %v334_v33, %v331_v27 }
 0x105   :  { %v801_v36 = vpop.f32.mrf.mxu0  ;;  %v817_v37 = vpop.f32.mrf.mxu1 }
 0x106   :  { %664 = vst [vmem:[#allocation7] sm:$0xff] %v663_v34   ;;  %747 = vst [vmem:[#allocation7 + $0x40] sm:$0xff] %v703_v35  }
 0x107   :  { %v283_v38 = vpop.f32.mrf.mxu0  ;;  %v347_v39 = vpop.f32.mrf.mxu1 }
 0x109   :  { %v802_v40 = vpop.f32.mrf.mxu0  ;;  %v818_v41 = vpop.f32.mrf.mxu1 }
 0x10a   :  { %v678_v42 = vpack.c.bf16 %v802_v40, %v801_v36  ;;  %v718_v43 = vpack.c.bf16 %v818_v41, %v817_v37 }
 0x10b   :  { %v286_v44 = vpop.f32.mrf.mxu0  ;;  %v350_v45 = vpop.f32.mrf.mxu1 }
 0x10c   :  { %742 = vst [vmem:[#allocation7 + $0x18] sm:$0xff] %v678_v42   ;;  %750 = vst [vmem:[#allocation7 + $0x58] sm:$0xff] %v718_v43   ;;  %v673_v46 = vpack.c.bf16 %v286_v44, %v283_v38  ;;  %v713_v47 = vpack.c.bf16 %v350_v45, %v347_v39 }
 0x10d   :  { %v805_v48 = vpop.f32.mrf.mxu0  ;;  %v821_v49 = vpop.f32.mrf.mxu1 }
 0x10e   :  { %741 = vst [vmem:[#allocation7 + $0x10] sm:$0xff] %v673_v46   ;;  %749 = vst [vmem:[#allocation7 + $0x50] sm:$0xff] %v713_v47  }
 0x10f   :  { %v299_v50 = vpop.f32.mrf.mxu0  ;;  %v363_v51 = vpop.f32.mrf.mxu1 }
 0x111   :  { %v806_v52 = vpop.f32.mrf.mxu0  ;;  %v822_v53 = vpop.f32.mrf.mxu1 }
 0x112   :  { %v688_v54 = vpack.c.bf16 %v806_v52, %v805_v48  ;;  %v728_v55 = vpack.c.bf16 %v822_v53, %v821_v49 }
 0x113   :  { %v302_v56 = vpop.f32.mrf.mxu0  ;;  %v366_v57 = vpop.f32.mrf.mxu1 }
 0x114   :  { %744 = vst [vmem:[#allocation7 + $0x28] sm:$0xff] %v688_v54   ;;  %752 = vst [vmem:[#allocation7 + $0x68] sm:$0xff] %v728_v55   ;;  %v683_v58 = vpack.c.bf16 %v302_v56, %v299_v50  ;;  %v723_v59 = vpack.c.bf16 %v366_v57, %v363_v51 }
 0x115   :  { %v809_v60 = vpop.f32.mrf.mxu0  ;;  %v825_v61 = vpop.f32.mrf.mxu1 }
 0x116   :  { %743 = vst [vmem:[#allocation7 + $0x20] sm:$0xff] %v683_v58   ;;  %751 = vst [vmem:[#allocation7 + $0x60] sm:$0xff] %v723_v59  }
 0x117   :  { %v315_v62 = vpop.f32.mrf.mxu0  ;;  %v379_v63 = vpop.f32.mrf.mxu1 }
 0x119   :  { %v810_v0 = vpop.f32.mrf.mxu0  ;;  %v826_v1 = vpop.f32.mrf.mxu1 }
 0x11a   :  { %v698_v2 = vpack.c.bf16 %v810_v0, %v809_v60  ;;  %v738_v3 = vpack.c.bf16 %v826_v1, %v825_v61 }
 0x11b   :  { %v318_v4 = vpop.f32.mrf.mxu0  ;;  %v382_v5 = vpop.f32.mrf.mxu1 }
 0x11c   :  { %746 = vst [vmem:[#allocation7 + $0x38] sm:$0xff] %v698_v2   ;;  %754 = vst [vmem:[#allocation7 + $0x78] sm:$0xff] %v738_v3   ;;  %v693_v6 = vpack.c.bf16 %v318_v4, %v315_v62  ;;  %v733_v7 = vpack.c.bf16 %v382_v5, %v379_v63 }
 0x11e   :  { %745 = vst [vmem:[#allocation7 + $0x30] sm:$0xff] %v693_v6   ;;  %753 = vst [vmem:[#allocation7 + $0x70] sm:$0xff] %v733_v7  }
 0x11f   :  { %923 = shalt.err (!%p920_p0)
}
 0x120   :  { %565 = dma.vmem_to_hbm [thread:$0]  %s560_s1, 2048, %s978_s2, [#allocation4], %s939_s12, %s939_s12, %s940_s13  }
 0x121   :  { %936 = dma.done.wait [#allocation4], 2048  }
 0x122   :  { %937 = vsyncadd [#allocation4], 4294965248 }
 0x123   :  { %569 = vsyncpa [#allocation3], 1 }
 0x124   :  { %570 = vsyncpa [#allocation6], 1 }
 0x125   :  { %571 = vsyncpa [#allocation4], 1 }

</bundles_post_ra>
